<compile_context>
chip_gen: v5e
topology: v5e:2x2
jax: 0.10.0
libtpu: 0.0.40
codegen_flags: <defaults>
</compile_context>

<pallas_src>
import functools

import jax
import jax.numpy as jnp
from jax.experimental import pallas as pl
from jax.experimental.pallas import tpu as pltpu


# --------------------------------------------------------------------------
# Kernels
# --------------------------------------------------------------------------
def _adaln_kernel(c_ref, wa_ref, ba_ref, mod_ref):
    """mod[:, tile] = Swish(c) @ W_ada[:, tile] + b_ada[tile]."""
    c = c_ref[...].astype(jnp.float32)
    sw = (c * jax.nn.sigmoid(c)).astype(wa_ref.dtype)      # Swish, native MXU dtype
    mod_ref[...] = (
        jnp.dot(sw, wa_ref[...], preferred_element_type=jnp.float32)
        + ba_ref[...].astype(jnp.float32)
    )


def _final_kernel(x_ref, we_ref, be_ref, o_ref, *, eps):
    """out = LayerNorm(x) @ W_eff + b_eff on one (tT, H) token tile.

    x_ref:  (tT, H)   tokens
    we_ref: (H, O)    per-batch modulated weights  W_lin * (1+scale)[:, None]
    be_ref: (1, O)    per-batch effective bias     shift @ W_lin + b_lin  (f32)
    o_ref:  (tT, O)
    """
    x = x_ref[...].astype(jnp.float32)
    mean = jnp.mean(x, axis=-1, keepdims=True)
    xc = x - mean
    var = jnp.mean(xc * xc, axis=-1, keepdims=True)
    # LN math in f32; feed the MXU operands in the weight's native dtype.
    xn = (xc * jax.lax.rsqrt(var + eps)).astype(we_ref.dtype)
    out = jnp.dot(xn, we_ref[...], preferred_element_type=jnp.float32)
    o_ref[...] = (out + be_ref[...]).astype(o_ref.dtype)


# --------------------------------------------------------------------------
# Tiling helpers
# --------------------------------------------------------------------------
def _round_up(x, m):
    return ((x + m - 1) // m) * m


def _vmem_capacity_bytes():
    try:
        cap = int(pltpu.get_tpu_info().vmem_capacity_bytes)
        if cap > 0:
            return cap
    except Exception:
        pass
    return 64 << 20  # conservative: v7x per-TC VMEM


def _pick_tile_t(T, Hp, Op, x_itemsize, w_itemsize, budget, batch):
    """Token-tile rows: sublane-packed, VMEM-budgeted (lane-padded), >=~8 steps."""
    sub = {4: 8, 2: 16, 1: 32}.get(x_itemsize, 8)
    # Double-buffered, lane-padded footprints.
    weight_bytes = 2 * Hp * Op * w_itemsize + 2 * Op * 4          # W_eff + b_eff
    per_row = 2 * (Hp + Op) * x_itemsize                          # x row + out row
    cap_rows = max(sub, (budget - weight_bytes) // per_row)
    # Keep >= ~8 total grid steps: v7x's 2 TCs each see >=2 steps (megacore),
    # and B=1 runs still get DMA/compute overlap.
    target_steps = -(-8 // max(1, batch))
    cap_rows = min(cap_rows, max(sub, -(-T // target_steps)))
    cap_rows = int(min(cap_rows, T))
    if cap_rows >= T:
        return T
    tT = max(sub, (cap_rows // sub) * sub)
    # Prefer a divisor of T (no ragged tail / no masked final store).
    for cand in range(tT, sub - 1, -sub):
        if T % cand == 0:
            return cand
    return min(tT, T)  # ragged last tile handled via cdiv grid


def _pick_tile_n(N, Hp, w_itemsize, budget):
    """Column tile for the adaLN weight (H, 2H): bound the (H, tN) block."""
    cap = max(128, budget // (2 * Hp * w_itemsize))
    if cap >= N:
        return N
    tN = max(128, (cap // 128) * 128)
    for cand in range(tN, 127, -128):
        if N % cand == 0:
            return cand
    return min(tN, N)  # ragged last tile handled via cdiv grid


# --------------------------------------------------------------------------
# Wrapper
# --------------------------------------------------------------------------
def final_layer_pallas(x, c, w_ada, b_ada, w_lin, b_lin, *, eps=1e-6):
    """FinalLayer forward.

    x:     (B, T, H)   tokens
    c:     (B, H)      conditioning
    w_ada: (H, 2H), b_ada: (2H,)   adaLN linear (mod = swish(c) @ w_ada + b_ada)
    w_lin: (H, O),  b_lin: (O,)    final projection (O = patch*patch*out_channels)
    Returns (B, T, O).
    """
    B, T, H = x.shape
    O = w_lin.shape[-1]
    assert c.shape == (B, H)
    assert w_ada.shape == (H, 2 * H) and b_ada.shape == (2 * H,)
    assert w_lin.shape == (H, O) and b_lin.shape == (O,)

    vmem_cap = _vmem_capacity_bytes()
    vmem_limit = int(min((vmem_cap * 3) // 4, 64 << 20))
    block_budget = int(min(vmem_cap // 4, 20 << 20))

    Hp = _round_up(H, 128)
    Op = _round_up(O, 128)
    two_h = 2 * H

    # --- conditioning path: Swish + adaLN Linear, tiled over the 2H axis ---
    tN = _pick_tile_n(two_h, Hp, w_ada.dtype.itemsize, block_budget)
    mod = pl.pallas_call(
        _adaln_kernel,
        out_shape=jax.ShapeDtypeStruct((B, two_h), jnp.float32),
        grid_spec=pltpu.PrefetchScalarGridSpec(
            num_scalar_prefetch=0,
            grid=(pl.cdiv(two_h, tN),),
            in_specs=[
                pl.BlockSpec((B, H), lambda j: (0, 0)),     # c (resident)
                pl.BlockSpec((H, tN), lambda j: (0, j)),    # W_ada column tile
                pl.BlockSpec((1, tN), lambda j: (0, j)),    # b_ada tile
            ],
            out_specs=pl.BlockSpec((B, tN), lambda j: (0, j)),
        ),
        compiler_params=pltpu.CompilerParams(
            dimension_semantics=("parallel",),
            vmem_limit_bytes=vmem_limit,
        ),
    )(c, w_ada, b_ada.reshape(1, two_h))

    # torch .chunk(2, dim=1) semantics + modulate fold (tiny one-off JAX glue):
    #   W_eff[b] = W_lin * (1 + scale[b])[:, None];  b_eff[b] = shift[b] @ W_lin + b_lin
    shift = mod[:, :H]                                     # (B, H) f32
    scale = mod[:, H:]                                     # (B, H) f32
    wl_f32 = w_lin.astype(jnp.float32)
    b_eff = (shift @ wl_f32 + b_lin.astype(jnp.float32)).reshape(B, 1, O)   # f32
    w_eff = ((1.0 + scale)[:, :, None] * wl_f32[None, :, :]).astype(w_lin.dtype)

    # --- hot path: LayerNorm + projection ---
    tT = _pick_tile_t(T, Hp, Op, x.dtype.itemsize, w_lin.dtype.itemsize,
                      block_budget, B)
    grid = (B, pl.cdiv(T, tT))

    itemsize = x.dtype.itemsize
    cost = pl.CostEstimate(
        flops=2 * B * T * H * O + 8 * B * T * H,
        transcendentals=B * T,  # one rsqrt per token row
        bytes_accessed=(B * T * H + B * T * O) * itemsize
        + B * H * O * w_lin.dtype.itemsize + B * O * 4,
    )

    return pl.pallas_call(
        functools.partial(_final_kernel, eps=eps),
        out_shape=jax.ShapeDtypeStruct((B, T, O), x.dtype),
        grid_spec=pltpu.PrefetchScalarGridSpec(
            num_scalar_prefetch=0,
            grid=grid,
            in_specs=[
                pl.BlockSpec((None, tT, H), lambda b, t: (b, t, 0)),  # x tile
                pl.BlockSpec((None, H, O), lambda b, t: (b, 0, 0)),   # W_eff[b]
                pl.BlockSpec((None, 1, O), lambda b, t: (b, 0, 0)),   # b_eff[b]
            ],
            out_specs=pl.BlockSpec((None, tT, O), lambda b, t: (b, t, 0)),
        ),
        compiler_params=pltpu.CompilerParams(
            dimension_semantics=("parallel", "parallel"),
            vmem_limit_bytes=vmem_limit,
        ),
        cost_estimate=cost,
    )(x, w_eff, b_eff)


# --------------------------------------------------------------------------
# Self-test
# --------------------------------------------------------------------------
if __name__ == "__main__":
    key = jax.random.PRNGKey(0)
    # Small shapes consistent with the module: batch=2, seq=8, hidden=32,
    # patch_size=2, out_channels=4  ->  O = 2*2*4 = 16.
    B, T, H = 2, 8, 32
    patch, out_ch = 2, 4
    O = patch * patch * out_ch

    ks = jax.random.split(key, 6)
    x = jax.random.normal(ks[0], (B, T, H), dtype=jnp.float32)
    c = jax.random.normal(ks[1], (B, H), dtype=jnp.float32)
    w_ada = jax.random.normal(ks[2], (H, 2 * H), dtype=jnp.float32) / jnp.sqrt(H)
    b_ada = jax.random.normal(ks[3], (2 * H,), dtype=jnp.float32) * 0.1
    w_lin = jax.random.normal(ks[4], (H, O), dtype=jnp.float32) / jnp.sqrt(H)
    b_lin = jax.random.normal(ks[5], (O,), dtype=jnp.float32) * 0.1

    y = final_layer_pallas(x, c, w_ada, b_ada, w_lin, b_lin)
    jax.block_until_ready(y)

    # Pure-JAX reference (same math as the PyTorch module).
    sw = c * jax.nn.sigmoid(c)
    mod_ref = sw @ w_ada + b_ada
    shift_ref, scale_ref = mod_ref[:, :H], mod_ref[:, H:]
    mu = x.mean(axis=-1, keepdims=True)
    var = ((x - mu) ** 2).mean(axis=-1, keepdims=True)
    xn = (x - mu) / jnp.sqrt(var + 1e-6)
    xm = xn * (1.0 + scale_ref[:, None, :]) + shift_ref[:, None, :]
    y_ref = xm @ w_lin + b_lin

    assert y.shape == (B, T, O)
    max_err = float(jnp.max(jnp.abs(y - y_ref)))
    assert jnp.allclose(y, y_ref, atol=2e-2, rtol=2e-2), max_err

    print("KERNEL_OK")
</pallas_src>

<mosaic_0001>
module attributes {stable_mosaic.version = 11 : i64} {
  func.func @_adaln_kernel(%arg0: i32, %arg1: memref<2x32xf32, #tpu.memory_space<vmem>>, %arg2: memref<32x64xf32, #tpu.memory_space<vmem>>, %arg3: memref<1x64xf32, #tpu.memory_space<vmem>>, %arg4: memref<2x64xf32, #tpu.memory_space<vmem>>) attributes {dimension_semantics = [#tpu.dimension_semantics<parallel>], iteration_bounds = array<i64: 1>, scalar_prefetch = 0 : i64, scratch_operands = 0 : i64, tpu.core_type = #tpu.core_type<tc>, window_params = [{pipeline_mode = #tpu.pipeline_mode<synchronous>, transform_indices = @transform_0, window_bounds = array<i64: 2, 32>}, {transform_indices = @transform_1, window_bounds = array<i64: 32, 64>}, {transform_indices = @transform_2, window_bounds = array<i64: 1, 64>}, {transform_indices = @transform_3, window_bounds = array<i64: 2, 64>}]} {
    %c0 = arith.constant 0 : index
    %c0_0 = arith.constant 0 : index
    %0 = vector.load %arg1[%c0, %c0_0] : memref<2x32xf32, #tpu.memory_space<vmem>>, vector<2x32xf32>
    %1 = arith.negf %0 : vector<2x32xf32>
    %2 = math.exp %1 : vector<2x32xf32>
    %cst = arith.constant 1.000000e+00 : f32
    %3 = vector.broadcast %cst : f32 to vector<2x32xf32>
    %4 = arith.addf %3, %2 : vector<2x32xf32>
    %5 = arith.divf %3, %4 : vector<2x32xf32>
    %6 = arith.mulf %0, %5 : vector<2x32xf32>
    %c0_1 = arith.constant 0 : index
    %c0_2 = arith.constant 0 : index
    %7 = vector.load %arg2[%c0_1, %c0_2] : memref<32x64xf32, #tpu.memory_space<vmem>>, vector<32x64xf32>
    %cst_3 = arith.constant dense<0.000000e+00> : vector<2x64xf32>
    %8 = tpu.matmul %6, %7, %cst_3 {dimension_numbers = #tpu.dot_dimension_numbers<[1], [0], [0], [1], [0, 0, 1, 1], [], []>} : vector<2x32xf32>, vector<32x64xf32>, vector<2x64xf32> -> vector<2x64xf32>
    %c0_4 = arith.constant 0 : index
    %c0_5 = arith.constant 0 : index
    %9 = vector.load %arg3[%c0_4, %c0_5] : memref<1x64xf32, #tpu.memory_space<vmem>>, vector<1x64xf32>
    %10 = vector.broadcast %9 : vector<1x64xf32> to vector<2x64xf32>
    %11 = arith.addf %8, %10 : vector<2x64xf32>
    %c0_6 = arith.constant 0 : index
    %c0_7 = arith.constant 0 : index
    %12 = vector.load %arg4[%c0_6, %c0_7] : memref<2x64xf32, #tpu.memory_space<vmem>>, vector<2x64xf32>
    tpu.vector_store %arg4[%c0_6, %c0_7], %11 {strides = array<i32>} : memref<2x64xf32, #tpu.memory_space<vmem>>, vector<2x64xf32>,
    return
  }
  func.func @transform_0(%arg0: i32) -> (i32, i32) {
    %c0_i32 = arith.constant 0 : i32
    %c0_i32_0 = arith.constant 0 : i32
    %c0_i32_1 = arith.constant 0 : i32
    return %c0_i32, %c0_i32_0 : i32, i32
  }
  func.func @transform_1(%arg0: i32) -> (i32, i32) {
    %c0_i32 = arith.constant 0 : i32
    %c0_i32_0 = arith.constant 0 : i32
    return %c0_i32, %arg0 : i32, i32
  }
  func.func @transform_2(%arg0: i32) -> (i32, i32) {
    %c0_i32 = arith.constant 0 : i32
    %c0_i32_0 = arith.constant 0 : i32
    return %c0_i32, %arg0 : i32, i32
  }
  func.func @transform_3(%arg0: i32) -> (i32, i32) {
    %c0_i32 = arith.constant 0 : i32
    %c0_i32_0 = arith.constant 0 : i32
    return %c0_i32, %arg0 : i32, i32
  }
}

</mosaic_0001>

<bundles_post_ra>
// kernel: tpu_custom_call.1
= control target key start
LH: loop header
LB: loop body
LE: loop exit
PB: predicated region body
PF: predicated region fallthrough
CT: control target
= control target key end

     0   :  { %8 = vsyncpa [#allocation3], 0  ;;  %s245_s0 = inlined_call_operand.hbm [shape: f32[2,32], index: 0, kind: input, shape index: {}]   ;;  %s246_s1 = inlined_call_operand.hbm [shape: f32[32,64], index: 1, kind: input, shape index: {}]   ;;  %s247_s2 = inlined_call_operand.vmem [shape: f32[1,64], index: 2, kind: input, shape index: {}]   ;;  %s248_s3 = inlined_call_operand.hbm [shape: f32[2,64], index: 3, kind: output, shape index: {}]  }
   0x1   :  { %9 = vsyncpa [#allocation6], 0 }
   0x2   :  { %10 = vsyncpa [#allocation4], 0  ;;  %s16_s14 = sshll.u32 %s245_s0, 4  ;;  %s208_s15 = smov [#allocation2]   ;;  %s17_s14 = int_to_ptr.hbm [resolvable:$true] %s16_s14 }
   0x3   :  { %s18_s16 = sshll.u32 %s208_s15, 4  ;;  %s26_s19 = sshll.u32 %s246_s1, 4  ;;  %s19_s16 = int_to_ptr.vmem [resolvable:$true] %s18_s16  ;;  %s27_s19 = int_to_ptr.hbm [resolvable:$true] %s26_s19 }
   0x4   :  { %21 = dma.hbm_to_vmem [thread:$0]  %s17_s14, 32, %s19_s16, [#allocation3]  }
   0x5   :  { %s209_s20 = smov [#allocation5]   ;;  %s210_s22 = smov 128  }
   0x6   :  { %s28_s21 = sshll.u32 %s209_s20, 4  ;;  %s211_s23 = smov 8   ;;  %s29_s21 = int_to_ptr.vmem [resolvable:$true] %s28_s21 }
   0x7   :  { %34 = dma.hbm_to_vmem [thread:$0]  %s27_s19, 512, %s29_s21, [#allocation6], %s210_s22, %s210_s22, %s211_s23  }
   0x8   :  { %202 = dma.done.wait [#allocation3], 32  }
   0x9   :  { %203 = vsyncadd [#allocation3], 4294967264 }
   0xa   :  { %204 = dma.done.wait [#allocation6], 512  }
   0xb   :  { %205 = vsyncadd [#allocation6], 4294966784  ;;  %v69_v0 = vld [vmem:[#allocation5 + $0x18] sm:$0xff]  ;;  %v68_v1 = vld [vmem:[#allocation5 + $0x10] sm:$0xff]  ;;  %vm74_vm4 = vcmask 261120   ;;  %s212_s24 = smov [#allocation7]  }
   0xc   :  { %90 = vmatpush.msra.mxu0 %v69_v0  ;;  %v45_v2 = vld [vmem:[#allocation2] sm:$0x3]  ;;  %v67_v3 = vld [vmem:[#allocation5 + $0x8] sm:$0xff]  ;;  %v66_v5 = vld [vmem:[#allocation5] sm:$0xff]  ;;  %s105_s25 = sshll.u32 %s212_s24, 4  ;;  %s107_s28 = sshll.u32 %s248_s3, 4  ;;  %s106_s25 = int_to_ptr.vmem [resolvable:$true] %s105_s25  ;;  %s108_s28 = int_to_ptr.hbm [resolvable:$true] %s107_s28 }
   0xd   :  { %v118_v4 = vmul.f32 -1.442695, %v45_v2  ;;  %v125_v19 = vld [vmem:[%s247_s2] ss:$0 sm:$0xff]  ;;  %vm98_vm5 = vcmask 517120  }
   0xe   :  { %91 = vmatpush.msra.mxu0 %v68_v1 }
   0xf   :  { %126 = vpow2.f32 %v118_v4 }
  0x10   :  { %92 = vmatpush.msra.mxu0 %v67_v3 }
  0x12   :  { %93 = vmatpush.msra.mxu0 %v66_v5 }
  0x15   :  { %v127_v6 = vpop.eup %126 }
  0x16   :  { %v49_v7 = vadd.f32 1.0, %v127_v6 }
  0x18   :  { %128 = vrcp.f32 %v49_v7  ;;  %v61_v10 = vand.u32 2147483648, %v49_v7  ;;  %vm55_vm0 = vweird.f32 %v49_v7  ;;  %v59_v12 = vand.u32 2147483647, %v49_v7 }
  0x1a   :  { %v62_v14 = vor.u32 1.1754944e-38, %v61_v10  ;;  %vm60_vm3 = vcmp.eq.f32.partialorder %v59_v12, 8.507059e+37 }
  0x1e   :  { %v129_v8 = vpop.eup %128 }
  0x1f   :  { %v51_v9 = vmul.f32 %v129_v8, %v49_v7  ;;  %vm56_vm1 = vweird.f32 %v129_v8 }
  0x20   :  { %vm57_vm2 = vmor %vm55_vm0, %vm56_vm1 }
  0x21   :  { %v52_v11 = vsub.f32 1.0, %v51_v9 }
  0x23   :  { %v53_v13 = vmul.f32 %v129_v8, %v52_v11 }
  0x25   :  { %v54_v15 = vadd.f32 %v129_v8, %v53_v13 }
  0x27   :  { %v58_v16 = vsel %vm57_vm2, %v129_v8, %v54_v15 }
  0x28   :  { %v63_v17 = vsel %vm60_vm3, %v62_v14, %v58_v16 }
  0x29   :  { %v65_v18 = vmul.f32 %v63_v17, %v45_v2 }
  0x2b   :  { %119 = vmatmul.msk.f32.vlgmr.msra.gmra.mxu0 %vm74_vm4, %v65_v18 }
  0xa8   :  { %v95_v20 = vpop.f32.mrf.mxu0 }
  0xa9   :  { %v96_v21 = vadd.f32 %v125_v19, %v95_v20 }
  0xab   :  { %99 = vst.msk [vmem:[#allocation7] sm:$0x3] %vm98_vm5, %v96_v21 }
  0xac   :  { %110 = dma.vmem_to_hbm [thread:$0]  %s106_s25, 32, %s108_s28, [#allocation4]  }
  0xad   :  { %206 = dma.done.wait [#allocation4], 32  }
  0xae   :  { %207 = vsyncadd [#allocation4], 4294967264 }
  0xaf   :  { %115 = vsyncpa [#allocation3], 1 }
  0xb0   :  { %116 = vsyncpa [#allocation6], 1 }
  0xb1   :  { %117 = vsyncpa [#allocation4], 1 }

</bundles_post_ra>
